<compile_context>
chip_gen: v5e
topology: v5e:2x2
jax: 0.10.0
libtpu: 0.0.40
codegen_flags: <defaults>
</compile_context>

<pallas_src>
import functools

import jax
import jax.numpy as jnp
from jax import lax
from jax.experimental import pallas as pl
from jax.experimental.pallas import tpu as pltpu

LANE = 128
SUBLANE = 8
# 1024 chunks * (8, 128) * 4 B = 4 MiB per f32 input tile; two inputs,
# double-buffered -> ~16 MiB streaming VMEM, under the explicit 40 MiB limit
# (v7x physical VMEM is 64 MiB per core; v5e/v6e have 128 MiB).
MAX_BLOCK_CHUNKS = 1024
# Split the row-block stream across (up to) 2 TensorCores: ~2x HBM streaming
# on v7x; on single-core v5e/v6e the axis just serializes.
NUM_CORES = 2


def _accumulate(x, t, o_ref):
    # Reduce the (bc, 8, 128) tile to vreg-sized (8, 128) partials: a pure
    # VPU add-tree over the leading axis (each leading slice is one f32 vreg).
    o_ref[0, 0] += jnp.sum(x * t, axis=0)
    o_ref[0, 1] += jnp.sum(x, axis=0)
    o_ref[0, 2] += jnp.sum(t, axis=0)


def _ftl_kernel(x_ref, t_ref, o_ref, *, num_cores, blocks_per_core,
                num_blocks, valid_chunks_last):
    c = pl.program_id(0)            # core-parallel axis
    i = pl.program_id(1)            # sequential reduction axis
    g = c * blocks_per_core + i     # global row-block index

    @pl.when(i == 0)
    def _init():
        o_ref[...] = jnp.zeros_like(o_ref)

    x = x_ref[...].astype(jnp.float32)
    t = t_ref[...].astype(jnp.float32)

    ragged = valid_chunks_last is not None              # static
    has_oob = num_cores * blocks_per_core > num_blocks  # static

    if not ragged and not has_oob:
        _accumulate(x, t, o_ref)
    else:
        last = num_blocks - 1

        # Hot path: full in-range blocks, zero masking work.
        @pl.when(g < last)
        def _full():
            _accumulate(x, t, o_ref)

        # Final real block: mask chunks past the end of the array.
        @pl.when(g == last)
        def _tail():
            if ragged:
                chunk = lax.broadcasted_iota(jnp.int32, x.shape, 0)
                keep = chunk < valid_chunks_last
                _accumulate(jnp.where(keep, x, 0.0),
                            jnp.where(keep, t, 0.0), o_ref)
            else:
                _accumulate(x, t, o_ref)
        # g > last: clamped duplicate block (only when num_blocks is not a
        # multiple of num_cores) -> contributes nothing.


def focal_tversky_loss(inputs, targets, alpha=0.5, beta=0.5, gamma=1.0,
                       smooth=1.0):
    x = inputs.reshape(-1)
    t = targets.reshape(-1)
    n = x.shape[0]

    elems_per_chunk = SUBLANE * LANE
    n_pad = pl.cdiv(n, elems_per_chunk) * elems_per_chunk
    if n_pad != n:
        # Rare for segmentation shapes (N*C*H*W is almost always a multiple of
        # 1024); zero padding is exactly neutral for TP / sum(x) / sum(t).
        # TODO(synk): replace this full-copy pad with in-kernel element-level
        # masking of a 1-D tail so unaligned sizes avoid the extra HBM pass.
        x = jnp.pad(x, (0, n_pad - n))
        t = jnp.pad(t, (0, n_pad - n))

    chunks = n_pad // elems_per_chunk
    # dtype preserved end-to-end (bf16 / int8 targets stream at native width);
    # the f32 cast happens inside the kernel.
    x3 = x.reshape(chunks, SUBLANE, LANE)
    t3 = t.reshape(chunks, SUBLANE, LANE)

    block_chunks = min(MAX_BLOCK_CHUNKS, chunks)
    num_blocks = pl.cdiv(chunks, block_chunks)
    num_cores = min(NUM_CORES, num_blocks)
    blocks_per_core = pl.cdiv(num_blocks, num_cores)
    rem = chunks - (num_blocks - 1) * block_chunks
    valid_chunks_last = rem if rem != block_chunks else None

    kernel = functools.partial(
        _ftl_kernel,
        num_cores=num_cores,
        blocks_per_core=blocks_per_core,
        num_blocks=num_blocks,
        valid_chunks_last=valid_chunks_last,
    )

    def in_map(c, i):
        # Clamp so an out-of-range duplicate still maps to a valid block; its
        # contribution is masked to zero inside the kernel.
        return (jnp.minimum(c * blocks_per_core + i, num_blocks - 1), 0, 0)

    partials = pl.pallas_call(
        kernel,
        out_shape=jax.ShapeDtypeStruct((num_cores, 3, SUBLANE, LANE),
                                       jnp.float32),
        grid_spec=pltpu.PrefetchScalarGridSpec(
            num_scalar_prefetch=0,
            grid=(num_cores, blocks_per_core),
            in_specs=[
                pl.BlockSpec((block_chunks, SUBLANE, LANE), in_map),
                pl.BlockSpec((block_chunks, SUBLANE, LANE), in_map),
            ],
            out_specs=pl.BlockSpec((1, 3, SUBLANE, LANE),
                                   lambda c, i: (c, 0, 0, 0)),
        ),
        compiler_params=pltpu.CompilerParams(
            dimension_semantics=("parallel", "arbitrary"),
            vmem_limit_bytes=40 * 1024 * 1024,
        ),
    )(x3, t3)

    # Tiny epilogue: combine per-core vreg partials and do the scalar math.
    sums = jnp.sum(partials, axis=(0, 2, 3))
    tp = sums[0]
    fp = sums[1] - tp          # == sum((1 - t) * x)
    fn = sums[2] - tp          # == sum(t * (1 - x))
    tversky = (tp + smooth) / (tp + alpha * fp + beta * fn + smooth)
    # Clamp: rounding in the algebraic FP/FN can push tversky a hair above 1,
    # which would NaN under a non-integer gamma.
    return jnp.maximum(1.0 - tversky, 0.0) ** gamma


def _reference(inputs, targets, alpha=0.5, beta=0.5, gamma=1.0, smooth=1.0):
    x = inputs.reshape(-1).astype(jnp.float32)
    t = targets.reshape(-1).astype(jnp.float32)
    tp = jnp.sum(x * t)
    fp = jnp.sum((1.0 - t) * x)
    fn = jnp.sum(t * (1.0 - x))
    tversky = (tp + smooth) / (tp + alpha * fp + beta * fn + smooth)
    return (1.0 - tversky) ** gamma


if __name__ == "__main__":
    key = jax.random.PRNGKey(0)
    k1, k2 = jax.random.split(key)
    # NCHW-like shapes consistent with a segmentation head output.
    # (The PyTorch module expects probabilities; sigmoid is applied here.)
    inputs = jax.nn.sigmoid(jax.random.normal(k1, (2, 4, 16, 16), jnp.float32))
    targets = (jax.random.uniform(k2, (2, 4, 16, 16)) > 0.5).astype(jnp.float32)

    loss = focal_tversky_loss(inputs, targets, alpha=0.5, beta=0.5, gamma=1.0)
    loss = jax.block_until_ready(loss)

    ref = _reference(inputs, targets, alpha=0.5, beta=0.5, gamma=1.0)
    assert jnp.allclose(loss, ref, rtol=1e-5, atol=1e-5), (loss, ref)
    print("KERNEL_OK")
</pallas_src>

<mosaic_0001>
module attributes {stable_mosaic.version = 11 : i64} {
  func.func @_ftl_kernel(%arg0: i32, %arg1: i32, %arg2: memref<2x8x128xf32, #tpu.memory_space<vmem>>, %arg3: memref<2x8x128xf32, #tpu.memory_space<vmem>>, %arg4: memref<1x3x8x128xf32, #tpu.memory_space<vmem>>) attributes {dimension_semantics = [#tpu.dimension_semantics<parallel>, #tpu.dimension_semantics<arbitrary>], iteration_bounds = array<i64: 1, 1>, scalar_prefetch = 0 : i64, scratch_operands = 0 : i64, tpu.core_type = #tpu.core_type<tc>, window_params = [{transform_indices = @transform_0, window_bounds = array<i64: 2, 8, 128>}, {transform_indices = @transform_1, window_bounds = array<i64: 2, 8, 128>}, {transform_indices = @transform_2, window_bounds = array<i64: 1, 3, 8, 128>}]} {
    %c0_i32 = arith.constant 0 : i32
    %0 = arith.cmpi eq, %arg1, %c0_i32 : i32
    %1 = arith.extui %0 : i1 to i32
    %c0_i32_0 = arith.constant 0 : i32
    %2 = arith.cmpi ne, %1, %c0_i32_0 : i32
    scf.if %2 {
      %cst_30 = arith.constant 0.000000e+00 : f32
      %27 = vector.broadcast %cst_30 : f32 to vector<1x3x8x128xf32>
      %c0_31 = arith.constant 0 : index
      %c0_32 = arith.constant 0 : index
      %c0_33 = arith.constant 0 : index
      %c0_34 = arith.constant 0 : index
      %28 = vector.load %arg4[%c0_31, %c0_32, %c0_33, %c0_34] : memref<1x3x8x128xf32, #tpu.memory_space<vmem>>, vector<1x3x8x128xf32>
      tpu.vector_store %arg4[%c0_31, %c0_32, %c0_33, %c0_34], %27 {strides = array<i32>} : memref<1x3x8x128xf32, #tpu.memory_space<vmem>>, vector<1x3x8x128xf32>,
    } else {
    }
    %c0 = arith.constant 0 : index
    %c0_1 = arith.constant 0 : index
    %c0_2 = arith.constant 0 : index
    %3 = vector.load %arg2[%c0, %c0_1, %c0_2] : memref<2x8x128xf32, #tpu.memory_space<vmem>>, vector<2x8x128xf32>
    %c0_3 = arith.constant 0 : index
    %c0_4 = arith.constant 0 : index
    %c0_5 = arith.constant 0 : index
    %4 = vector.load %arg3[%c0_3, %c0_4, %c0_5] : memref<2x8x128xf32, #tpu.memory_space<vmem>>, vector<2x8x128xf32>
    %c0_6 = arith.constant 0 : index
    %c0_7 = arith.constant 0 : index
    %c0_8 = arith.constant 0 : index
    %c0_9 = arith.constant 0 : index
    %5 = vector.load %arg4[%c0_6, %c0_7, %c0_8, %c0_9] : memref<1x3x8x128xf32, #tpu.memory_space<vmem>>, vector<1x1x8x128xf32>
    %6 = vector.shape_cast %5 : vector<1x1x8x128xf32> to vector<8x128xf32>
    %7 = arith.mulf %3, %4 : vector<2x8x128xf32>
    %cst = arith.constant dense<0.000000e+00> : vector<8x128xf32>
    %8 = vector.multi_reduction <add>, %7, %cst [0] : vector<2x8x128xf32> to vector<8x128xf32>
    %9 = arith.addf %6, %8 : vector<8x128xf32>
    %c0_10 = arith.constant 0 : index
    %c0_11 = arith.constant 0 : index
    %c0_12 = arith.constant 0 : index
    %c0_13 = arith.constant 0 : index
    %10 = vector.load %arg4[%c0_10, %c0_11, %c0_12, %c0_13] : memref<1x3x8x128xf32, #tpu.memory_space<vmem>>, vector<1x1x8x128xf32>
    %11 = vector.shape_cast %10 : vector<1x1x8x128xf32> to vector<8x128xf32>
    %12 = vector.shape_cast %9 : vector<8x128xf32> to vector<1x1x8x128xf32>
    tpu.vector_store %arg4[%c0_10, %c0_11, %c0_12, %c0_13], %12 {strides = array<i32>} : memref<1x3x8x128xf32, #tpu.memory_space<vmem>>, vector<1x1x8x128xf32>,
    %c0_14 = arith.constant 0 : index
    %c1 = arith.constant 1 : index
    %c0_15 = arith.constant 0 : index
    %c0_16 = arith.constant 0 : index
    %13 = vector.load %arg4[%c0_14, %c1, %c0_15, %c0_16] : memref<1x3x8x128xf32, #tpu.memory_space<vmem>>, vector<1x1x8x128xf32>
    %14 = vector.shape_cast %13 : vector<1x1x8x128xf32> to vector<8x128xf32>
    %cst_17 = arith.constant dense<0.000000e+00> : vector<8x128xf32>
    %15 = vector.multi_reduction <add>, %3, %cst_17 [0] : vector<2x8x128xf32> to vector<8x128xf32>
    %16 = arith.addf %14, %15 : vector<8x128xf32>
    %c0_18 = arith.constant 0 : index
    %c1_19 = arith.constant 1 : index
    %c0_20 = arith.constant 0 : index
    %c0_21 = arith.constant 0 : index
    %17 = vector.load %arg4[%c0_18, %c1_19, %c0_20, %c0_21] : memref<1x3x8x128xf32, #tpu.memory_space<vmem>>, vector<1x1x8x128xf32>
    %18 = vector.shape_cast %17 : vector<1x1x8x128xf32> to vector<8x128xf32>
    %19 = vector.shape_cast %16 : vector<8x128xf32> to vector<1x1x8x128xf32>
    tpu.vector_store %arg4[%c0_18, %c1_19, %c0_20, %c0_21], %19 {strides = array<i32>} : memref<1x3x8x128xf32, #tpu.memory_space<vmem>>, vector<1x1x8x128xf32>,
    %c0_22 = arith.constant 0 : index
    %c2 = arith.constant 2 : index
    %c0_23 = arith.constant 0 : index
    %c0_24 = arith.constant 0 : index
    %20 = vector.load %arg4[%c0_22, %c2, %c0_23, %c0_24] : memref<1x3x8x128xf32, #tpu.memory_space<vmem>>, vector<1x1x8x128xf32>
    %21 = vector.shape_cast %20 : vector<1x1x8x128xf32> to vector<8x128xf32>
    %cst_25 = arith.constant dense<0.000000e+00> : vector<8x128xf32>
    %22 = vector.multi_reduction <add>, %4, %cst_25 [0] : vector<2x8x128xf32> to vector<8x128xf32>
    %23 = arith.addf %21, %22 : vector<8x128xf32>
    %c0_26 = arith.constant 0 : index
    %c2_27 = arith.constant 2 : index
    %c0_28 = arith.constant 0 : index
    %c0_29 = arith.constant 0 : index
    %24 = vector.load %arg4[%c0_26, %c2_27, %c0_28, %c0_29] : memref<1x3x8x128xf32, #tpu.memory_space<vmem>>, vector<1x1x8x128xf32>
    %25 = vector.shape_cast %24 : vector<1x1x8x128xf32> to vector<8x128xf32>
    %26 = vector.shape_cast %23 : vector<8x128xf32> to vector<1x1x8x128xf32>
    tpu.vector_store %arg4[%c0_26, %c2_27, %c0_28, %c0_29], %26 {strides = array<i32>} : memref<1x3x8x128xf32, #tpu.memory_space<vmem>>, vector<1x1x8x128xf32>,
    return
  }
  func.func @transform_0(%arg0: i32, %arg1: i32) -> (i32, i32, i32) {
    %c1_i32 = arith.constant 1 : i32
    %0 = arith.muli %arg0, %c1_i32 : i32
    %1 = arith.addi %0, %arg1 : i32
    %c0_i32 = arith.constant 0 : i32
    %2 = arith.minsi %1, %c0_i32 : i32
    %c0_i32_0 = arith.constant 0 : i32
    %c0_i32_1 = arith.constant 0 : i32
    %c0_i32_2 = arith.constant 0 : i32
    return %2, %c0_i32_0, %c0_i32_1 : i32, i32, i32
  }
  func.func @transform_1(%arg0: i32, %arg1: i32) -> (i32, i32, i32) {
    %c1_i32 = arith.constant 1 : i32
    %0 = arith.muli %arg0, %c1_i32 : i32
    %1 = arith.addi %0, %arg1 : i32
    %c0_i32 = arith.constant 0 : i32
    %2 = arith.minsi %1, %c0_i32 : i32
    %c0_i32_0 = arith.constant 0 : i32
    %c0_i32_1 = arith.constant 0 : i32
    %c0_i32_2 = arith.constant 0 : i32
    return %2, %c0_i32_0, %c0_i32_1 : i32, i32, i32
  }
  func.func @transform_2(%arg0: i32, %arg1: i32) -> (i32, i32, i32, i32) {
    %c0_i32 = arith.constant 0 : i32
    %c0_i32_0 = arith.constant 0 : i32
    %c0_i32_1 = arith.constant 0 : i32
    %c0_i32_2 = arith.constant 0 : i32
    return %arg0, %c0_i32, %c0_i32_0, %c0_i32_1 : i32, i32, i32, i32
  }
}

</mosaic_0001>

<bundles_post_ra>
// kernel: tpu_custom_call.1
= control target key start
LH: loop header
LB: loop body
LE: loop exit
PB: predicated region body
PF: predicated region fallthrough
CT: control target
= control target key end

     0   :  { %7 = vsyncpa [#allocation3], 0  ;;  %s237_s0 = inlined_call_operand.hbm [shape: f32[2,8,128], index: 0, kind: input, shape index: {}]   ;;  %s238_s1 = inlined_call_operand.hbm [shape: f32[2,8,128], index: 1, kind: input, shape index: {}]   ;;  %s239_s2 = inlined_call_operand.hbm [shape: f32[1,3,8,128], index: 2, kind: output, shape index: {}]  }
   0x1   :  { %8 = vsyncpa [#allocation6], 0 }
   0x2   :  { %9 = vsyncpa [#allocation4], 0  ;;  %s20_s11 = sshll.u32 %s237_s0, 4  ;;  %s199_s12 = smov [#allocation2]   ;;  %s21_s11 = int_to_ptr.hbm [resolvable:$true] %s20_s11 }
   0x3   :  { %s22_s13 = sshll.u32 %s199_s12, 4  ;;  %s39_s16 = sshll.u32 %s238_s1, 4  ;;  %s23_s13 = int_to_ptr.vmem [resolvable:$true] %s22_s13  ;;  %s40_s16 = int_to_ptr.hbm [resolvable:$true] %s39_s16 }
   0x4   :  { %s200_s17 = smov 128   ;;  %s201_s18 = smov 8  }
   0x5   :  { %28 = dma.hbm_to_vmem [thread:$0]  %s21_s11, 256, %s23_s13, [#allocation3], %s200_s17, %s200_s17, %s201_s18  }
   0x6   :  { %s202_s19 = smov [#allocation5]  }
   0x7   :  { %s41_s20 = sshll.u32 %s202_s19, 4  ;;  %s42_s20 = int_to_ptr.vmem [resolvable:$true] %s41_s20 }
   0x8   :  { %47 = dma.hbm_to_vmem [thread:$0]  %s40_s16, 256, %s42_s20, [#allocation6], %s200_s17, %s200_s17, %s201_s18  }
   0x9   :  { %193 = dma.done.wait [#allocation3], 256  }
   0xa   :  { %194 = vsyncadd [#allocation3], 4294967040 }
   0xb   :  { %195 = dma.done.wait [#allocation6], 256  }
   0xc   :  { %196 = vsyncadd [#allocation6], 4294967040  ;;  %v71_v0 = vld [vmem:[#allocation2] sm:$0xff]  ;;  %v72_v1 = vld [vmem:[#allocation2 + $0x8] sm:$0xff]  ;;  %s203_s0 = smov [#allocation7]   ;;  %s97_s23 = sshll.u32 %s239_s2, 4  ;;  %s98_s23 = int_to_ptr.hbm [resolvable:$true] %s97_s23 }
   0xd   :  { %v73_v2 = vld [vmem:[#allocation5] sm:$0xff]  ;;  %v74_v3 = vld [vmem:[#allocation5 + $0x8] sm:$0xff]  ;;  %v83_v5 = vadd.f32 %v72_v1, %v71_v0  ;;  %s95_s1 = sshll.u32 %s203_s0, 4  ;;  %s96_s1 = int_to_ptr.vmem [resolvable:$true] %s95_s1 }
   0xe   :  { %v76_v4 = vmul.f32 %v73_v2, %v71_v0  ;;  %v77_v6 = vmul.f32 %v74_v3, %v72_v1  ;;  %v88_v7 = vadd.f32 %v74_v3, %v73_v2 }
   0xf   :  { %85 = vst [vmem:[#allocation7 + $0x8] sm:$0xff] %v83_v5 }
  0x10   :  { %v78_v8 = vadd.f32 %v77_v6, %v76_v4  ;;  %90 = vst [vmem:[#allocation7 + $0x10] sm:$0xff] %v88_v7 }
  0x12   :  { %80 = vst [vmem:[#allocation7] sm:$0xff] %v78_v8 }
  0x13   :  { %103 = dma.vmem_to_hbm [thread:$0]  %s96_s1, 384, %s98_s23, [#allocation4], %s200_s17, %s200_s17, %s201_s18  }
  0x14   :  { %197 = dma.done.wait [#allocation4], 384  }
  0x15   :  { %198 = vsyncadd [#allocation4], 4294966912 }
  0x16   :  { %108 = vsyncpa [#allocation3], 1 }
  0x17   :  { %109 = vsyncpa [#allocation6], 1 }
  0x18   :  { %110 = vsyncpa [#allocation4], 1 }

</bundles_post_ra>
